<compile_context>
chip_gen: v7x
topology: tpu7x:2x2x1
jax: 0.10.0
libtpu: 0.0.40
codegen_flags: <defaults>
</compile_context>

<pallas_src>
import functools

import jax
import jax.numpy as jnp
from jax import lax
from jax.experimental import pallas as pl
from jax.experimental.pallas import tpu as pltpu


# ---------------------------------------------------------------------------
# Generation-aware VMEM budget (v7x: 64 MiB physical, v5e/v6e: 128 MiB).
# ---------------------------------------------------------------------------
@functools.lru_cache(maxsize=1)
def _vmem_limit_bytes():
    try:
        cap = int(pltpu.get_tpu_info().vmem_capacity_bytes)
        return max(32 * 1024 * 1024, (cap * 3) // 4)
    except Exception:                      # conservative fallback, fits v7x
        return 48 * 1024 * 1024


def _compiler_params(dim_semantics):
    return pltpu.CompilerParams(
        dimension_semantics=dim_semantics,
        vmem_limit_bytes=_vmem_limit_bytes(),
    )


def _pick_row_tile(n_rows, max_tile=512):
    """Largest sublane-aligned row tile that still yields >=2 grid blocks
    (DMA pipelining + 2-TC sharding on v7x).  The tile need not divide N:
    ragged tails are handled by the cdiv grid / masked edge blocks."""
    for t in (max_tile, 256, 128, 64, 32, 16, 8):
        if (n_rows + t - 1) // t >= 2:
            return t
    return n_rows


def _pick_seq_tile(length, max_tile=512):
    """Largest tile dividing `length` exactly (attention tiles must divide —
    stray kv rows would corrupt the softmax)."""
    for t in (max_tile, 256, 128, 64, 32, 16, 8):
        if length % t == 0:
            return t
    return length


def _pick_head_block(n_vheads, tq, tk, budget_bytes=8 * 1024 * 1024):
    """Largest divisor of B*H giving >=2 grid blocks (when possible) and a
    bounded f32 score block [g, tq, tk]."""
    best = 1
    for g in range(1, n_vheads + 1):
        if n_vheads % g:
            continue
        if n_vheads >= 2 and n_vheads // g < 2:
            continue
        if g * tq * tk * 4 > budget_bytes:
            continue
        best = g
    return best


# ----------------------------- Pallas kernels ------------------------------

def _qkv_proj_kernel(x_ref, w_ref, b_ref, q_ref, k_ref, v_ref):
    # x: [tm, D] f32, w: [D, 3D] bf16 (Wq pre-scaled by dh^-0.5), b: [1, 3D] f32
    d = q_ref.shape[-1]
    xb = x_ref[...].astype(w_ref.dtype)            # bf16 operands -> full MXU rate
    y = jnp.dot(xb, w_ref[...],
                preferred_element_type=jnp.float32) + b_ref[...]
    # NOTE: for dim_model not a multiple of 128 these column slices cross lane
    # tiles and cost an in-register relayout; pad dim_model to 128 for prod.
    q_ref[...] = y[:, 0 * d:1 * d].astype(q_ref.dtype)
    k_ref[...] = y[:, 1 * d:2 * d].astype(k_ref.dtype)
    v_ref[...] = y[:, 2 * d:3 * d].astype(v_ref.dtype)


def _attn_kernel(q_ref, k_ref, v_ref, o_ref, m_sc, l_sc, acc_sc):
    # blocks: q [g, tq, dh], k/v [g, tk, dh] (bf16).  Online softmax over the
    # kv grid axis so the score block stays [g, tq, tk] (never a full
    # [H, L, L] tensor in VMEM — matters most on v7x's 64 MiB).
    kv = pl.program_id(2)

    @pl.when(kv == 0)
    def _init():
        m_sc[...] = jnp.full(m_sc.shape, -jnp.inf, m_sc.dtype)
        l_sc[...] = jnp.zeros(l_sc.shape, l_sc.dtype)
        acc_sc[...] = jnp.zeros(acc_sc.shape, acc_sc.dtype)

    # scale (dh^-0.5) already folded into Wq/bq at prepare_params() time.
    s = jnp.einsum("gqd,gkd->gqk", q_ref[...], k_ref[...],
                   preferred_element_type=jnp.float32)
    m_new = jnp.maximum(m_sc[...], jnp.max(s, axis=-1, keepdims=True))
    alpha = jnp.exp(m_sc[...] - m_new)
    p = jnp.exp(s - m_new)
    l_sc[...] = alpha * l_sc[...] + jnp.sum(p, axis=-1, keepdims=True)
    acc_sc[...] = alpha * acc_sc[...] + jnp.einsum(
        "gqk,gkd->gqd", p.astype(v_ref.dtype), v_ref[...],
        preferred_element_type=jnp.float32)
    m_sc[...] = m_new

    @pl.when(kv == pl.num_programs(2) - 1)
    def _finalize():
        inv_l = pl.reciprocal(l_sc[...], approx=True)   # EUP slot, off the VALU path
        o_ref[...] = (acc_sc[...] * inv_l).astype(o_ref.dtype)


def _out_proj_ln_kernel(ctx_ref, x_ref, w_ref, b_ref, g_ref, beta_ref, o_ref,
                        *, eps):
    # ctx: [tm, D] bf16, x: [tm, D] f32, w: [D, D] bf16, b/g/beta: [1, D] f32
    x = x_ref[...]                                   # residual stays exact f32
    out = jnp.dot(ctx_ref[...], w_ref[...],
                  preferred_element_type=jnp.float32) + b_ref[...]
    # dropout(p=0.0) is identity
    out = out + x
    mean = jnp.mean(out, axis=-1, keepdims=True)
    var = jnp.mean(jnp.square(out - mean), axis=-1, keepdims=True)
    out = (out - mean) * lax.rsqrt(var + eps)
    o_ref[...] = (out * g_ref[...] + beta_ref[...]).astype(o_ref.dtype)


# ------------------------------ wrapper -------------------------------------

def prepare_params(params, num_head):
    """Once-per-model weight prep: transposes, QKV fusion, bf16 cast, and the
    1/sqrt(dim_head) attention scale folded into Wq / bq (free at run time)."""
    dim_model = params["wq"].shape[0]
    assert dim_model % num_head == 0
    scale = (dim_model // num_head) ** (-0.5)
    w_qkv = jnp.concatenate(
        [params["wq"].T * scale, params["wk"].T, params["wv"].T],
        axis=1).astype(jnp.bfloat16)                                 # [D, 3D]
    b_qkv = jnp.concatenate(
        [params["bq"] * scale, params["bk"], params["bv"]]
    )[None, :].astype(jnp.float32)                                   # [1, 3D]
    return dict(
        w_qkv=w_qkv, b_qkv=b_qkv,
        wo_t=params["wo"].T.astype(jnp.bfloat16),
        bo=params["bo"][None, :].astype(jnp.float32),
        gamma=params["gamma"][None, :].astype(jnp.float32),
        beta=params["beta"][None, :].astype(jnp.float32),
    )


def multi_head_attention(x, prepared, num_head):
    """Pallas implementation of Multi_Head_Attention.forward (eval mode)."""
    B, L, D = x.shape
    assert D % num_head == 0
    dh = D // num_head
    N = B * L
    BH = B * num_head

    x2 = x.reshape(N, D)                              # contiguous -> free
    tm = _pick_row_tile(N)
    n_row_blocks = pl.cdiv(N, tm)
    row_spec = pl.BlockSpec((tm, D), lambda i: (i, 0))

    # --- fused QKV projection: bf16 operands, f32 accumulation --------------
    q, k, v = pl.pallas_call(
        _qkv_proj_kernel,
        out_shape=[jax.ShapeDtypeStruct((N, D), jnp.bfloat16)] * 3,
        grid=(n_row_blocks,),
        in_specs=[row_spec,
                  pl.BlockSpec((D, 3 * D), lambda i: (0, 0)),    # resident
                  pl.BlockSpec((1, 3 * D), lambda i: (0, 0))],   # resident
        out_specs=[row_spec] * 3,
        compiler_params=_compiler_params(("parallel",)),
    )(x2, prepared["w_qkv"], prepared["b_qkv"])
    # TODO(synk): for dim_model >= 2048 the resident [D, 3D] weight should get
    # its own K-reduction grid axis instead of sitting double-buffered in VMEM.

    # exact .view semantics of the PyTorch module (raw row-major reshape that
    # mixes seq/feature dims — bug-for-bug port); contiguous -> no HBM copy.
    q3 = q.reshape(BH, L, dh)
    k3 = k.reshape(BH, L, dh)
    v3 = v.reshape(BH, L, dh)

    # --- scaled dot-product attention: online softmax over kv tiles ---------
    tq = _pick_seq_tile(L)
    tk = _pick_seq_tile(L)
    g = _pick_head_block(BH, tq, tk)
    qo_spec = pl.BlockSpec((g, tq, dh), lambda b, qi, ki: (b, qi, 0))
    kv_spec = pl.BlockSpec((g, tk, dh), lambda b, qi, ki: (b, ki, 0))
    # TODO(synk): output lanes are dh-wide (masked stores); a lane-dense [L,D]
    # store is impossible while reproducing the module's raw .view head split.
    ctx = pl.pallas_call(
        _attn_kernel,
        out_shape=jax.ShapeDtypeStruct((BH, L, dh), jnp.bfloat16),
        grid=(BH // g, L // tq, L // tk),
        in_specs=[qo_spec, kv_spec, kv_spec],
        out_specs=qo_spec,
        scratch_shapes=[pltpu.VMEM((g, tq, 1), jnp.float32),    # running max m
                        pltpu.VMEM((g, tq, 1), jnp.float32),    # running sum l
                        pltpu.VMEM((g, tq, dh), jnp.float32)],  # accumulator
        compiler_params=_compiler_params(("parallel", "parallel", "arbitrary")),
    )(q3, k3, v3)

    ctx2 = ctx.reshape(N, D)                          # contiguous -> free

    # --- output projection + residual + LayerNorm (eps=1e-5), row-tiled -----
    out = pl.pallas_call(
        functools.partial(_out_proj_ln_kernel, eps=1e-5),
        out_shape=jax.ShapeDtypeStruct((N, D), jnp.float32),
        grid=(n_row_blocks,),
        in_specs=[row_spec, row_spec,
                  pl.BlockSpec((D, D), lambda i: (0, 0)),        # resident
                  pl.BlockSpec((1, D), lambda i: (0, 0)),
                  pl.BlockSpec((1, D), lambda i: (0, 0)),
                  pl.BlockSpec((1, D), lambda i: (0, 0))],
        out_specs=row_spec,
        compiler_params=_compiler_params(("parallel",)),
    )(ctx2, x2, prepared["wo_t"], prepared["bo"],
      prepared["gamma"], prepared["beta"])

    return out.reshape(B, L, D)


# ---------------------------- reference (pure JAX) ---------------------------

def multi_head_attention_ref(x, params, num_head):
    B, L, D = x.shape
    dh = D // num_head
    q = x @ params["wq"].T + params["bq"]
    k = x @ params["wk"].T + params["bk"]
    v = x @ params["wv"].T + params["bv"]
    q = q.reshape(B * num_head, L, dh)
    k = k.reshape(B * num_head, L, dh)
    v = v.reshape(B * num_head, L, dh)
    s = jnp.einsum("bld,bmd->blm", q, k) * (dh ** -0.5)
    p = jax.nn.softmax(s, axis=-1)
    ctx = jnp.einsum("blm,bmd->bld", p, v).reshape(B, L, D)
    out = ctx @ params["wo"].T + params["bo"]
    out = out + x
    mean = out.mean(-1, keepdims=True)
    var = ((out - mean) ** 2).mean(-1, keepdims=True)
    out = (out - mean) / jnp.sqrt(var + 1e-5)
    return out * params["gamma"] + params["beta"]


# --------------------------------- main --------------------------------------

if __name__ == "__main__":
    B, L, D, H = 2, 8, 32, 4   # batch, seq, dim_model, num_head

    key = jax.random.PRNGKey(0)
    keys = jax.random.split(key, 10)
    bound = 1.0 / (D ** 0.5)   # torch nn.Linear default init bound

    def lin(kw, kb):
        w = jax.random.uniform(kw, (D, D), jnp.float32, -bound, bound)
        b = jax.random.uniform(kb, (D,), jnp.float32, -bound, bound)
        return w, b

    wq, bq = lin(keys[0], keys[1])
    wk, bk = lin(keys[2], keys[3])
    wv, bv = lin(keys[4], keys[5])
    wo, bo = lin(keys[6], keys[7])
    params = dict(wq=wq, bq=bq, wk=wk, bk=bk, wv=wv, bv=bv, wo=wo, bo=bo,
                  gamma=jnp.ones((D,), jnp.float32),
                  beta=jnp.zeros((D,), jnp.float32))

    x = jax.random.normal(keys[8], (B, L, D), jnp.float32)

    prepared = jax.block_until_ready(prepare_params(params, H))   # hoisted, once

    mha = jax.jit(multi_head_attention, static_argnums=2)
    out = jax.block_until_ready(mha(x, prepared, H))
    ref = jax.block_until_ready(multi_head_attention_ref(x, params, H))

    assert out.shape == (B, L, D)
    # bf16 matmul operands / bf16 HBM intermediates (f32 accumulation) plus the
    # approximate EUP reciprocal in the softmax denominator -> compare against
    # the pure-f32 reference at bf16-level tolerance.
    err = float(jnp.max(jnp.abs(out - ref)))
    assert err < 5e-2, f"max abs err {err}"

    print("KERNEL_OK")
</pallas_src>

<mosaic_0001>
module attributes {stable_mosaic.version = 11 : i64} {
  func.func @_qkv_proj_kernel(%arg0: i32, %arg1: memref<8x32xf32, #tpu.memory_space<vmem>>, %arg2: memref<32x96xbf16, #tpu.memory_space<vmem>>, %arg3: memref<1x96xf32, #tpu.memory_space<vmem>>, %arg4: memref<8x32xbf16, #tpu.memory_space<vmem>>, %arg5: memref<8x32xbf16, #tpu.memory_space<vmem>>, %arg6: memref<8x32xbf16, #tpu.memory_space<vmem>>) attributes {dimension_semantics = [#tpu.dimension_semantics<parallel>], iteration_bounds = array<i64: 2>, scalar_prefetch = 0 : i64, scratch_operands = 0 : i64, tpu.core_type = #tpu.core_type<tc>, window_params = [{transform_indices = @transform_0, window_bounds = array<i64: 8, 32>}, {pipeline_mode = #tpu.pipeline_mode<synchronous>, transform_indices = @transform_1, window_bounds = array<i64: 32, 96>}, {pipeline_mode = #tpu.pipeline_mode<synchronous>, transform_indices = @transform_2, window_bounds = array<i64: 1, 96>}, {transform_indices = @transform_3, window_bounds = array<i64: 8, 32>}, {transform_indices = @transform_4, window_bounds = array<i64: 8, 32>}, {transform_indices = @transform_5, window_bounds = array<i64: 8, 32>}]} {
    %c0 = arith.constant 0 : index
    %c0_0 = arith.constant 0 : index
    %0 = vector.load %arg1[%c0, %c0_0] : memref<8x32xf32, #tpu.memory_space<vmem>>, vector<8x32xf32>
    %1 = arith.truncf %0 : vector<8x32xf32> to vector<8x32xbf16>
    %c0_1 = arith.constant 0 : index
    %c0_2 = arith.constant 0 : index
    %2 = vector.load %arg2[%c0_1, %c0_2] : memref<32x96xbf16, #tpu.memory_space<vmem>>, vector<32x96xbf16>
    %cst = arith.constant dense<0.000000e+00> : vector<8x96xf32>
    %3 = tpu.matmul %1, %2, %cst {dimension_numbers = #tpu.dot_dimension_numbers<[1], [0], [0], [1], [0, 0, 1, 1], [], []>} : vector<8x32xbf16>, vector<32x96xbf16>, vector<8x96xf32> -> vector<8x96xf32>
    %c0_3 = arith.constant 0 : index
    %c0_4 = arith.constant 0 : index
    %4 = vector.load %arg3[%c0_3, %c0_4] : memref<1x96xf32, #tpu.memory_space<vmem>>, vector<1x96xf32>
    %5 = vector.broadcast %4 : vector<1x96xf32> to vector<8x96xf32>
    %6 = arith.addf %3, %5 : vector<8x96xf32>
    %7 = vector.extract_strided_slice %6 {offsets = [0, 0], sizes = [8, 32], strides = [1, 1]} : vector<8x96xf32> to vector<8x32xf32>
    %8 = arith.truncf %7 : vector<8x32xf32> to vector<8x32xbf16>
    %c0_5 = arith.constant 0 : index
    %c0_6 = arith.constant 0 : index
    %9 = vector.load %arg4[%c0_5, %c0_6] : memref<8x32xbf16, #tpu.memory_space<vmem>>, vector<8x32xbf16>
    tpu.vector_store %arg4[%c0_5, %c0_6], %8 {strides = array<i32>} : memref<8x32xbf16, #tpu.memory_space<vmem>>, vector<8x32xbf16>,
    %10 = vector.extract_strided_slice %6 {offsets = [0, 32], sizes = [8, 32], strides = [1, 1]} : vector<8x96xf32> to vector<8x32xf32>
    %11 = arith.truncf %10 : vector<8x32xf32> to vector<8x32xbf16>
    %c0_7 = arith.constant 0 : index
    %c0_8 = arith.constant 0 : index
    %12 = vector.load %arg5[%c0_7, %c0_8] : memref<8x32xbf16, #tpu.memory_space<vmem>>, vector<8x32xbf16>
    tpu.vector_store %arg5[%c0_7, %c0_8], %11 {strides = array<i32>} : memref<8x32xbf16, #tpu.memory_space<vmem>>, vector<8x32xbf16>,
    %13 = vector.extract_strided_slice %6 {offsets = [0, 64], sizes = [8, 32], strides = [1, 1]} : vector<8x96xf32> to vector<8x32xf32>
    %14 = arith.truncf %13 : vector<8x32xf32> to vector<8x32xbf16>
    %c0_9 = arith.constant 0 : index
    %c0_10 = arith.constant 0 : index
    %15 = vector.load %arg6[%c0_9, %c0_10] : memref<8x32xbf16, #tpu.memory_space<vmem>>, vector<8x32xbf16>
    tpu.vector_store %arg6[%c0_9, %c0_10], %14 {strides = array<i32>} : memref<8x32xbf16, #tpu.memory_space<vmem>>, vector<8x32xbf16>,
    return
  }
  func.func @transform_0(%arg0: i32) -> (i32, i32) {
    %c0_i32 = arith.constant 0 : i32
    %c0_i32_0 = arith.constant 0 : i32
    return %arg0, %c0_i32 : i32, i32
  }
  func.func @transform_1(%arg0: i32) -> (i32, i32) {
    %c0_i32 = arith.constant 0 : i32
    %c0_i32_0 = arith.constant 0 : i32
    %c0_i32_1 = arith.constant 0 : i32
    return %c0_i32, %c0_i32_0 : i32, i32
  }
  func.func @transform_2(%arg0: i32) -> (i32, i32) {
    %c0_i32 = arith.constant 0 : i32
    %c0_i32_0 = arith.constant 0 : i32
    %c0_i32_1 = arith.constant 0 : i32
    return %c0_i32, %c0_i32_0 : i32, i32
  }
  func.func @transform_3(%arg0: i32) -> (i32, i32) {
    %c0_i32 = arith.constant 0 : i32
    %c0_i32_0 = arith.constant 0 : i32
    return %arg0, %c0_i32 : i32, i32
  }
  func.func @transform_4(%arg0: i32) -> (i32, i32) {
    %c0_i32 = arith.constant 0 : i32
    %c0_i32_0 = arith.constant 0 : i32
    return %arg0, %c0_i32 : i32, i32
  }
  func.func @transform_5(%arg0: i32) -> (i32, i32) {
    %c0_i32 = arith.constant 0 : i32
    %c0_i32_0 = arith.constant 0 : i32
    return %arg0, %c0_i32 : i32, i32
  }
}

module attributes {stable_mosaic.version = 11 : i64} {
  func.func @_attn_kernel(%arg0: i32, %arg1: i32, %arg2: i32, %arg3: memref<4x8x8xbf16, #tpu.memory_space<vmem>>, %arg4: memref<4x8x8xbf16, #tpu.memory_space<vmem>>, %arg5: memref<4x8x8xbf16, #tpu.memory_space<vmem>>, %arg6: memref<4x8x8xbf16, #tpu.memory_space<vmem>>, %arg7: memref<4x8x1xf32, #tpu.memory_space<vmem>>, %arg8: memref<4x8x1xf32, #tpu.memory_space<vmem>>, %arg9: memref<4x8x8xf32, #tpu.memory_space<vmem>>) attributes {dimension_semantics = [#tpu.dimension_semantics<parallel>, #tpu.dimension_semantics<parallel>, #tpu.dimension_semantics<arbitrary>], iteration_bounds = array<i64: 2, 1, 1>, scalar_prefetch = 0 : i64, scratch_operands = 3 : i64, tpu.core_type = #tpu.core_type<tc>, window_params = [{transform_indices = @transform_0, window_bounds = array<i64: 4, 8, 8>}, {transform_indices = @transform_1, window_bounds = array<i64: 4, 8, 8>}, {transform_indices = @transform_2, window_bounds = array<i64: 4, 8, 8>}, {transform_indices = @transform_3, window_bounds = array<i64: 4, 8, 8>}]} {
    %c0_i32 = arith.constant 0 : i32
    %0 = arith.cmpi eq, %arg2, %c0_i32 : i32
    %1 = arith.extui %0 : i1 to i32
    %c0_i32_0 = arith.constant 0 : i32
    %2 = arith.cmpi ne, %1, %c0_i32_0 : i32
    scf.if %2 {
      %cst_35 = arith.constant 0xFF800000 : f32
      %34 = vector.broadcast %cst_35 : f32 to vector<4x8x1xf32>
      %c0_36 = arith.constant 0 : index
      %c0_37 = arith.constant 0 : index
      %c0_38 = arith.constant 0 : index
      %35 = vector.load %arg7[%c0_36, %c0_37, %c0_38] : memref<4x8x1xf32, #tpu.memory_space<vmem>>, vector<4x8x1xf32>
      tpu.vector_store %arg7[%c0_36, %c0_37, %c0_38], %34 {strides = array<i32>} : memref<4x8x1xf32, #tpu.memory_space<vmem>>, vector<4x8x1xf32>,
      %cst_39 = arith.constant 0.000000e+00 : f32
      %36 = vector.broadcast %cst_39 : f32 to vector<4x8x1xf32>
      %c0_40 = arith.constant 0 : index
      %c0_41 = arith.constant 0 : index
      %c0_42 = arith.constant 0 : index
      %37 = vector.load %arg8[%c0_40, %c0_41, %c0_42] : memref<4x8x1xf32, #tpu.memory_space<vmem>>, vector<4x8x1xf32>
      tpu.vector_store %arg8[%c0_40, %c0_41, %c0_42], %36 {strides = array<i32>} : memref<4x8x1xf32, #tpu.memory_space<vmem>>, vector<4x8x1xf32>,
      %cst_43 = arith.constant 0.000000e+00 : f32
      %38 = vector.broadcast %cst_43 : f32 to vector<4x8x8xf32>
      %c0_44 = arith.constant 0 : index
      %c0_45 = arith.constant 0 : index
      %c0_46 = arith.constant 0 : index
      %39 = vector.load %arg9[%c0_44, %c0_45, %c0_46] : memref<4x8x8xf32, #tpu.memory_space<vmem>>, vector<4x8x8xf32>
      tpu.vector_store %arg9[%c0_44, %c0_45, %c0_46], %38 {strides = array<i32>} : memref<4x8x8xf32, #tpu.memory_space<vmem>>, vector<4x8x8xf32>,
    } else {
    }
    %c0 = arith.constant 0 : index
    %c0_1 = arith.constant 0 : index
    %c0_2 = arith.constant 0 : index
    %3 = vector.load %arg3[%c0, %c0_1, %c0_2] : memref<4x8x8xbf16, #tpu.memory_space<vmem>>, vector<4x8x8xbf16>
    %c0_3 = arith.constant 0 : index
    %c0_4 = arith.constant 0 : index
    %c0_5 = arith.constant 0 : index
    %4 = vector.load %arg4[%c0_3, %c0_4, %c0_5] : memref<4x8x8xbf16, #tpu.memory_space<vmem>>, vector<4x8x8xbf16>
    "tpu.trace_start"() <{level = 10 : i32, message = "gqd,gkd->gqk"}> : () -> ()
    %cst = arith.constant dense<0.000000e+00> : vector<4x8x8xf32>
    %5 = tpu.matmul %3, %4, %cst {dimension_numbers = #tpu.dot_dimension_numbers<[2], [2], [1], [1], [0, 0, 0, 1, 1, 1], [0], [0]>} : vector<4x8x8xbf16>, vector<4x8x8xbf16>, vector<4x8x8xf32> -> vector<4x8x8xf32>
    "tpu.trace_stop"() : () -> ()
    %c0_6 = arith.constant 0 : index
    %c0_7 = arith.constant 0 : index
    %c0_8 = arith.constant 0 : index
    %6 = vector.load %arg7[%c0_6, %c0_7, %c0_8] : memref<4x8x1xf32, #tpu.memory_space<vmem>>, vector<4x8x1xf32>
    %cst_9 = arith.constant dense<0xFF800000> : vector<4x8xf32>
    %7 = vector.multi_reduction <maximumf>, %5, %cst_9 [2] : vector<4x8x8xf32> to vector<4x8xf32>
    %8 = vector.shape_cast %7 : vector<4x8xf32> to vector<4x8x1xf32>
    %9 = arith.maximumf %6, %8 : vector<4x8x1xf32>
    %c0_10 = arith.constant 0 : index
    %c0_11 = arith.constant 0 : index
    %c0_12 = arith.constant 0 : index
    %10 = vector.load %arg7[%c0_10, %c0_11, %c0_12] : memref<4x8x1xf32, #tpu.memory_space<vmem>>, vector<4x8x1xf32>
    %11 = arith.subf %10, %9 : vector<4x8x1xf32>
    %12 = math.exp %11 : vector<4x8x1xf32>
    %13 = vector.broadcast %9 : vector<4x8x1xf32> to vector<4x8x8xf32>
    %14 = arith.subf %5, %13 : vector<4x8x8xf32>
    %15 = math.exp %14 : vector<4x8x8xf32>
    %c0_13 = arith.constant 0 : index
    %c0_14 = arith.constant 0 : index
    %c0_15 = arith.constant 0 : index
    %16 = vector.load %arg8[%c0_13, %c0_14, %c0_15] : memref<4x8x1xf32, #tpu.memory_space<vmem>>, vector<4x8x1xf32>
    %17 = arith.mulf %12, %16 : vector<4x8x1xf32>
    %cst_16 = arith.constant dense<0.000000e+00> : vector<4x8xf32>
    %18 = vector.multi_reduction <add>, %15, %cst_16 [2] : vector<4x8x8xf32> to vector<4x8xf32>
    %19 = vector.shape_cast %18 : vector<4x8xf32> to vector<4x8x1xf32>
    %20 = arith.addf %17, %19 : vector<4x8x1xf32>
    %c0_17 = arith.constant 0 : index
    %c0_18 = arith.constant 0 : index
    %c0_19 = arith.constant 0 : index
    %21 = vector.load %arg8[%c0_17, %c0_18, %c0_19] : memref<4x8x1xf32, #tpu.memory_space<vmem>>, vector<4x8x1xf32>
    tpu.vector_store %arg8[%c0_17, %c0_18, %c0_19], %20 {strides = array<i32>} : memref<4x8x1xf32, #tpu.memory_space<vmem>>, vector<4x8x1xf32>,
    %c0_20 = arith.constant 0 : index
    %c0_21 = arith.constant 0 : index
    %c0_22 = arith.constant 0 : index
    %22 = vector.load %arg9[%c0_20, %c0_21, %c0_22] : memref<4x8x8xf32, #tpu.memory_space<vmem>>, vector<4x8x8xf32>
    %23 = vector.broadcast %12 : vector<4x8x1xf32> to vector<4x8x8xf32>
    %24 = arith.mulf %23, %22 : vector<4x8x8xf32>
    %25 = arith.truncf %15 : vector<4x8x8xf32> to vector<4x8x8xbf16>
    %c0_23 = arith.constant 0 : index
    %c0_24 = arith.constant 0 : index
    %c0_25 = arith.constant 0 : index
    %26 = vector.load %arg5[%c0_23, %c0_24, %c0_25] : memref<4x8x8xbf16, #tpu.memory_space<vmem>>, vector<4x8x8xbf16>
    "tpu.trace_start"() <{level = 10 : i32, message = "gqk,gkd->gqd"}> : () -> ()
    %cst_26 = arith.constant dense<0.000000e+00> : vector<4x8x8xf32>
    %27 = tpu.matmul %25, %26, %cst_26 {dimension_numbers = #tpu.dot_dimension_numbers<[2], [1], [1], [2], [0, 0, 0, 1, 1, 2], [0], [0]>} : vector<4x8x8xbf16>, vector<4x8x8xbf16>, vector<4x8x8xf32> -> vector<4x8x8xf32>
    "tpu.trace_stop"() : () -> ()
    %28 = arith.addf %24, %27 : vector<4x8x8xf32>
    %c0_27 = arith.constant 0 : index
    %c0_28 = arith.constant 0 : index
    %c0_29 = arith.constant 0 : index
    %29 = vector.load %arg9[%c0_27, %c0_28, %c0_29] : memref<4x8x8xf32, #tpu.memory_space<vmem>>, vector<4x8x8xf32>
    tpu.vector_store %arg9[%c0_27, %c0_28, %c0_29], %28 {strides = array<i32>} : memref<4x8x8xf32, #tpu.memory_space<vmem>>, vector<4x8x8xf32>,
    %c0_30 = arith.constant 0 : index
    %c0_31 = arith.constant 0 : index
    %c0_32 = arith.constant 0 : index
    %30 = vector.load %arg7[%c0_30, %c0_31, %c0_32] : memref<4x8x1xf32, #tpu.memory_space<vmem>>, vector<4x8x1xf32>
    tpu.vector_store %arg7[%c0_30, %c0_31, %c0_32], %9 {strides = array<i32>} : memref<4x8x1xf32, #tpu.memory_space<vmem>>, vector<4x8x1xf32>,
    %c0_i32_33 = arith.constant 0 : i32
    %31 = arith.cmpi eq, %arg2, %c0_i32_33 : i32
    %32 = arith.extui %31 : i1 to i32
    %c0_i32_34 = arith.constant 0 : i32
    %33 = arith.cmpi ne, %32, %c0_i32_34 : i32
    scf.if %33 {
      %c0_35 = arith.constant 0 : index
      %c0_36 = arith.constant 0 : index
      %c0_37 = arith.constant 0 : index
      %34 = vector.load %arg8[%c0_35, %c0_36, %c0_37] : memref<4x8x1xf32, #tpu.memory_space<vmem>>, vector<4x8x1xf32>
      %35 = tpu.reciprocal %34 {approx = true} : vector<4x8x1xf32> -> vector<4x8x1xf32>
      %c0_38 = arith.constant 0 : index
      %c0_39 = arith.constant 0 : index
      %c0_40 = arith.constant 0 : index
      %36 = vector.load %arg9[%c0_38, %c0_39, %c0_40] : memref<4x8x8xf32, #tpu.memory_space<vmem>>, vector<4x8x8xf32>
      %37 = vector.broadcast %35 : vector<4x8x1xf32> to vector<4x8x8xf32>
      %38 = arith.mulf %36, %37 : vector<4x8x8xf32>
      %39 = arith.truncf %38 : vector<4x8x8xf32> to vector<4x8x8xbf16>
      %c0_41 = arith.constant 0 : index
      %c0_42 = arith.constant 0 : index
      %c0_43 = arith.constant 0 : index
      %40 = vector.load %arg6[%c0_41, %c0_42, %c0_43] : memref<4x8x8xbf16, #tpu.memory_space<vmem>>, vector<4x8x8xbf16>
      tpu.vector_store %arg6[%c0_41, %c0_42, %c0_43], %39 {strides = array<i32>} : memref<4x8x8xbf16, #tpu.memory_space<vmem>>, vector<4x8x8xbf16>,
    } else {
    }
    return
  }
  func.func @transform_0(%arg0: i32, %arg1: i32, %arg2: i32) -> (i32, i32, i32) {
    %c0_i32 = arith.constant 0 : i32
    %c0_i32_0 = arith.constant 0 : i32
    return %arg0, %arg1, %c0_i32 : i32, i32, i32
  }
  func.func @transform_1(%arg0: i32, %arg1: i32, %arg2: i32) -> (i32, i32, i32) {
    %c0_i32 = arith.constant 0 : i32
    %c0_i32_0 = arith.constant 0 : i32
    return %arg0, %arg2, %c0_i32 : i32, i32, i32
  }
  func.func @transform_2(%arg0: i32, %arg1: i32, %arg2: i32) -> (i32, i32, i32) {
    %c0_i32 = arith.constant 0 : i32
    %c0_i32_0 = arith.constant 0 : i32
    return %arg0, %arg2, %c0_i32 : i32, i32, i32
  }
  func.func @transform_3(%arg0: i32, %arg1: i32, %arg2: i32) -> (i32, i32, i32) {
    %c0_i32 = arith.constant 0 : i32
    %c0_i32_0 = arith.constant 0 : i32
    return %arg0, %arg1, %c0_i32 : i32, i32, i32
  }
}

module attributes {stable_mosaic.version = 11 : i64} {
  func.func @_out_proj_ln_kernel(%arg0: i32, %arg1: memref<8x32xbf16, #tpu.memory_space<vmem>>, %arg2: memref<8x32xf32, #tpu.memory_space<vmem>>, %arg3: memref<32x32xbf16, #tpu.memory_space<vmem>>, %arg4: memref<1x32xf32, #tpu.memory_space<vmem>>, %arg5: memref<1x32xf32, #tpu.memory_space<vmem>>, %arg6: memref<1x32xf32, #tpu.memory_space<vmem>>, %arg7: memref<8x32xf32, #tpu.memory_space<vmem>>) attributes {dimension_semantics = [#tpu.dimension_semantics<parallel>], iteration_bounds = array<i64: 2>, scalar_prefetch = 0 : i64, scratch_operands = 0 : i64, tpu.core_type = #tpu.core_type<tc>, window_params = [{transform_indices = @transform_0, window_bounds = array<i64: 8, 32>}, {transform_indices = @transform_1, window_bounds = array<i64: 8, 32>}, {pipeline_mode = #tpu.pipeline_mode<synchronous>, transform_indices = @transform_2, window_bounds = array<i64: 32, 32>}, {pipeline_mode = #tpu.pipeline_mode<synchronous>, transform_indices = @transform_3, window_bounds = array<i64: 1, 32>}, {pipeline_mode = #tpu.pipeline_mode<synchronous>, transform_indices = @transform_4, window_bounds = array<i64: 1, 32>}, {pipeline_mode = #tpu.pipeline_mode<synchronous>, transform_indices = @transform_5, window_bounds = array<i64: 1, 32>}, {transform_indices = @transform_6, window_bounds = array<i64: 8, 32>}]} {
    %c0 = arith.constant 0 : index
    %c0_0 = arith.constant 0 : index
    %0 = vector.load %arg2[%c0, %c0_0] : memref<8x32xf32, #tpu.memory_space<vmem>>, vector<8x32xf32>
    %c0_1 = arith.constant 0 : index
    %c0_2 = arith.constant 0 : index
    %1 = vector.load %arg1[%c0_1, %c0_2] : memref<8x32xbf16, #tpu.memory_space<vmem>>, vector<8x32xbf16>
    %c0_3 = arith.constant 0 : index
    %c0_4 = arith.constant 0 : index
    %2 = vector.load %arg3[%c0_3, %c0_4] : memref<32x32xbf16, #tpu.memory_space<vmem>>, vector<32x32xbf16>
    %cst = arith.constant dense<0.000000e+00> : vector<8x32xf32>
    %3 = tpu.matmul %1, %2, %cst {dimension_numbers = #tpu.dot_dimension_numbers<[1], [0], [0], [1], [0, 0, 1, 1], [], []>} : vector<8x32xbf16>, vector<32x32xbf16>, vector<8x32xf32> -> vector<8x32xf32>
    %c0_5 = arith.constant 0 : index
    %c0_6 = arith.constant 0 : index
    %4 = vector.load %arg4[%c0_5, %c0_6] : memref<1x32xf32, #tpu.memory_space<vmem>>, vector<1x32xf32>
    %5 = vector.broadcast %4 : vector<1x32xf32> to vector<8x32xf32>
    %6 = arith.addf %3, %5 : vector<8x32xf32>
    %7 = arith.addf %6, %0 : vector<8x32xf32>
    %cst_7 = arith.constant dense<0.000000e+00> : vector<8xf32>
    %8 = vector.multi_reduction <add>, %7, %cst_7 [1] : vector<8x32xf32> to vector<8xf32>
    %9 = vector.shape_cast %8 : vector<8xf32> to vector<8x1xf32>
    %cst_8 = arith.constant 3.200000e+01 : f32
    %10 = vector.broadcast %cst_8 : f32 to vector<8x1xf32>
    %11 = arith.divf %9, %10 : vector<8x1xf32>
    %12 = vector.broadcast %11 : vector<8x1xf32> to vector<8x32xf32>
    %13 = arith.subf %7, %12 : vector<8x32xf32>
    %14 = arith.mulf %13, %13 : vector<8x32xf32>
    %cst_9 = arith.constant dense<0.000000e+00> : vector<8xf32>
    %15 = vector.multi_reduction <add>, %14, %cst_9 [1] : vector<8x32xf32> to vector<8xf32>
    %16 = vector.shape_cast %15 : vector<8xf32> to vector<8x1xf32>
    %cst_10 = arith.constant 3.200000e+01 : f32
    %17 = vector.broadcast %cst_10 : f32 to vector<8x1xf32>
    %18 = arith.divf %16, %17 : vector<8x1xf32>
    %19 = vector.broadcast %11 : vector<8x1xf32> to vector<8x32xf32>
    %20 = arith.subf %7, %19 : vector<8x32xf32>
    %cst_11 = arith.constant 9.99999974E-6 : f32
    %21 = vector.broadcast %cst_11 : f32 to vector<8x1xf32>
    %22 = arith.addf %18, %21 : vector<8x1xf32>
    %23 = math.rsqrt %22 : vector<8x1xf32>
    %24 = vector.broadcast %23 : vector<8x1xf32> to vector<8x32xf32>
    %25 = arith.mulf %20, %24 : vector<8x32xf32>
    %c0_12 = arith.constant 0 : index
    %c0_13 = arith.constant 0 : index
    %26 = vector.load %arg5[%c0_12, %c0_13] : memref<1x32xf32, #tpu.memory_space<vmem>>, vector<1x32xf32>
    %27 = vector.broadcast %26 : vector<1x32xf32> to vector<8x32xf32>
    %28 = arith.mulf %25, %27 : vector<8x32xf32>
    %c0_14 = arith.constant 0 : index
    %c0_15 = arith.constant 0 : index
    %29 = vector.load %arg6[%c0_14, %c0_15] : memref<1x32xf32, #tpu.memory_space<vmem>>, vector<1x32xf32>
    %30 = vector.broadcast %29 : vector<1x32xf32> to vector<8x32xf32>
    %31 = arith.addf %28, %30 : vector<8x32xf32>
    %c0_16 = arith.constant 0 : index
    %c0_17 = arith.constant 0 : index
    %32 = vector.load %arg7[%c0_16, %c0_17] : memref<8x32xf32, #tpu.memory_space<vmem>>, vector<8x32xf32>
    tpu.vector_store %arg7[%c0_16, %c0_17], %31 {strides = array<i32>} : memref<8x32xf32, #tpu.memory_space<vmem>>, vector<8x32xf32>,
    return
  }
  func.func @transform_0(%arg0: i32) -> (i32, i32) {
    %c0_i32 = arith.constant 0 : i32
    %c0_i32_0 = arith.constant 0 : i32
    return %arg0, %c0_i32 : i32, i32
  }
  func.func @transform_1(%arg0: i32) -> (i32, i32) {
    %c0_i32 = arith.constant 0 : i32
    %c0_i32_0 = arith.constant 0 : i32
    return %arg0, %c0_i32 : i32, i32
  }
  func.func @transform_2(%arg0: i32) -> (i32, i32) {
    %c0_i32 = arith.constant 0 : i32
    %c0_i32_0 = arith.constant 0 : i32
    %c0_i32_1 = arith.constant 0 : i32
    return %c0_i32, %c0_i32_0 : i32, i32
  }
  func.func @transform_3(%arg0: i32) -> (i32, i32) {
    %c0_i32 = arith.constant 0 : i32
    %c0_i32_0 = arith.constant 0 : i32
    %c0_i32_1 = arith.constant 0 : i32
    return %c0_i32, %c0_i32_0 : i32, i32
  }
  func.func @transform_4(%arg0: i32) -> (i32, i32) {
    %c0_i32 = arith.constant 0 : i32
    %c0_i32_0 = arith.constant 0 : i32
    %c0_i32_1 = arith.constant 0 : i32
    return %c0_i32, %c0_i32_0 : i32, i32
  }
  func.func @transform_5(%arg0: i32) -> (i32, i32) {
    %c0_i32 = arith.constant 0 : i32
    %c0_i32_0 = arith.constant 0 : i32
    %c0_i32_1 = arith.constant 0 : i32
    return %c0_i32, %c0_i32_0 : i32, i32
  }
  func.func @transform_6(%arg0: i32) -> (i32, i32) {
    %c0_i32 = arith.constant 0 : i32
    %c0_i32_0 = arith.constant 0 : i32
    return %arg0, %c0_i32 : i32, i32
  }
}

</mosaic_0001>

<bundles_post_ra>
// kernel: multi_head_attention.3
= control target key start
LH: loop header
LB: loop body
LE: loop exit
PB: predicated region body
PF: predicated region fallthrough
CT: control target
= control target key end

     0   :  { %11 = vsyncpa [#allocation3], 0  ;;  %s769_s0 = inlined_call_operand.hbm [shape: f32[16,32], index: 0, kind: input, shape index: {}]   ;;  %s770_s1 = inlined_call_operand.vmem [shape: bf16[32,96], index: 1, kind: input, shape index: {}]   ;;  %s771_s2 = inlined_call_operand.vmem [shape: f32[1,96], index: 2, kind: input, shape index: {}]   ;;  %s772_s3 = inlined_call_operand.vmem [shape: bf16[16,32], index: 3, kind: output, shape index: {0}]   ;;  %s773_s4 = inlined_call_operand.vmem [shape: bf16[16,32], index: 4, kind: output, shape index: {1}]   ;;  %s774_s5 = inlined_call_operand.vmem [shape: bf16[16,32], index: 5, kind: output, shape index: {2}]  }
   0x1   :  { %13 = vsyncpa [#allocation3 + $0x1], 0  ;;  %s647_s18 = smov 0   ;;  %s649_s19 = smov 0  }
   0x2   :  { %s651_s20 = smov 0   ;;  %s653_s21 = smov 0  }
   0x3 LB: > { %s666_s22 = sadd.s32 4294967295, %s610_s21   ;;  %s669_s23 = sadd.s32 1, %s610_s21   ;;  %s610_s21 = sphi %s653_s21, %s782_s21   ;;  %s606_s20 = sphi %s651_s20, %s781_s20   ;;  %s602_s19 = sphi %s649_s19, %s780_s19   ;;  %s598_s18 = sphi %s647_s18, %s779_s18  }
   0x4   : > { %s23_s24 = ssub.s32 %s610_s21, %s669_s23  ;;  %s26_s25 = sadd.s32 1, %s606_s20 }
   0x5   : > { %p24_p0 = scmp.eq.s32.totalorder %s23_s24, 0  ;;  %p33_p1 = scmp.ne.s32.totalorder %s606_s20, %s602_s19 }
   0x6   : > { %p34_p2 = scmp.eq.s32.totalorder %s610_s21, 0  ;;  %p39_p3 = scmp.ne.s32.totalorder %s602_s19, %s598_s18 }
   0x7   : > { %s679_s26 = scalar_select %p24_p0, %s606_s20, %s26_s25  }
   0x8   : > { %p35_p4 = por %p34_p2, %p33_p1  ;;  %p40_p5 = scmp.eq.s32.totalorder %s666_s22, 0 }
   0x9   : > { %p507_p6 = scmp.lt.s32.totalorder %s610_s21, 2  ;;  %s189_s28 = sand.u32 1, %s606_s20  }
   0xa   : > { %p683_p7 = por %p40_p5, %p39_p3  ;;  %s475_s29 = sshll.u32 %s189_s28, 3 }
   0xb   : > { %s476_s30 = sshll.u32 %s610_s21, 7  ;;  %s193_s9 = scalar_lea.vmem [#allocation2], %s475_s29 }
   0xc   : > { %s692_s8 = scalar_lea.hbm %s769_s0, %s476_s30  ;;  %s200_s10 = sshll.u32 %s193_s9, 4  ;;  %s694_s10 = int_to_ptr.vmem [resolvable:$true] %s200_s10 }
   0xd   : > { %p696_p8 = pnand %p507_p6, %p35_p4  ;;  %s190_s12 = scalar_lea.sflag [#allocation3], %s189_s28 }
   0xe   : > { %s546_s13 = scalar_lea.hbm %s692_s8, 128  ;;  %s551_s16 = scalar_lea.hbm %s769_s0, 256 }
   0xf   : > { %p547_p11 = scmp.ne.s32.totalorder %s692_s8, %s546_s13  ;;  %p548_p12 = pneg %p696_p8 }
  0x10   : > { %p552_p1 = scmp.lt.u32.totalorder %s692_s8, %s769_s0  ;;  %p553_p2 = scmp.lt.u32.totalorder %s551_s16, %s546_s13 }
  0x11   : > { %p549_p13 = pnand %p548_p12, %p547_p11  ;;  %p555_p4 = scmp.lt.u32.totalorder %s546_s13, %s692_s8 }
  0x12   : > { %p554_p3 = por %p553_p2, %p552_p1 }
  0x13   : > { %p550_p0 = pneg %p549_p13 }
  0x14   : > { %p556_p5 = por %p555_p4, %p554_p3 }
  0x16   : > { %p557_p6 = pnand %p556_p5, %p550_p0 }
  0x18   : > { %560 = shalt.err (!%p557_p6)
}
  0x19   : > { %s561_s24 = scalar_lea.vmem %s694_s10, 128  ;;  %s612_s25 = smov [#allocation2]  }
  0x1a   : > { %p562_p11 = scmp.ne.s32.totalorder %s694_s10, %s561_s24  ;;  %s566_s28 = sshll.u32 %s612_s25, 4  ;;  %s567_s28 = int_to_ptr.vmem [resolvable:$false] %s566_s28 }
  0x1b   : > { %s568_s29 = scalar_lea.vmem %s567_s28, 256  ;;  %p569_p10 = scmp.lt.s32.totalorder %s694_s10, %s567_s28 }
  0x1c   : > { %p564_p13 = pnand %p562_p11, %p548_p12  ;;  %p570_p1 = scmp.lt.s32.totalorder %s568_s29, %s561_s24 }
  0x1e   : > { %p565_p9 = pneg %p564_p13  ;;  %p571_p2 = por %p570_p1, %p569_p10 }
  0x20   : > { %p572_p3 = pnand %p571_p2, %p565_p9 }
  0x22   : > { %575 = shalt.err (!%p572_p3)
}
  0x23   : > { %506 = dma.hbm_to_vmem [thread:$0]  (!%p696_p8), %s692_s8, 128, %s694_s10, %s190_s12  }
  0x24   : > { %p777_p0 = scmp.lt.s32.totalorder %s610_s21, 3  ;;  %p778_p4 = scmp.ge.s32.totalorder %s610_s21, 1 }
  0x26   : > { %p206_p12 = pnand %p778_p4, %p777_p0 }
  0x27   : > { %s211_s30 = sand.u32 (!%p206_p12), 1, %s602_s19  }
  0x28   : > { %209 = sbr.rel (%p206_p12) target bundleno = 393 (0x189), region = 32  ;;  %s478_s6 = sshll.u32 (!%p206_p12), %s211_s30, 3 }
  0x29   : > { %s212_s7 = scalar_lea.sflag (!%p206_p12), [#allocation3], %s211_s30  ;;  %s215_s9 = scalar_lea.vmem (!%p206_p12), [#allocation2], %s478_s6 }
  0x2f   : > { %593 = dma.done.wait (%p683_p7), %s212_s7, 128  }
  0x30   : > { %595 = vsyncadd (%p683_p7), %s212_s7, 4294967168  ;;  %v613_v0 = vmov 0.0   ;;  %vm614_vm0 = vmmov 0   ;;  %v544_v1 = vld [vmem:[%s770_s1] sm:$0xff]   ;;  %v545_v2 = vld [vmem:[%s770_s1 + $0x8] sm:$0xff]   ;;  %vm287_vm1 = vcmask 261120  }
  0x31   : > { %493 = vmatprep.subr.bf16.mxu0 %v613_v0  ;;  %497 = vmatprep.mubr.msk.bf16.mxu0 %vm614_vm0, %v613_v0  ;;  %v262_v3 = vld [vmem:[%s215_s9] sm:$0xff]  ;;  %p249_p7 = scmp.lt.s32.totalorder %s666_s22, 1  ;;  %vm332_vm2 = vcmask 257024   ;;  %s615_s17 = smov 96  }
  0x32   : > { %494 = vmatpush3.bf16.msra.mxu0 %v544_v1  ;;  %v263_v4 = vpack.c.bf16 %v262_v3, %v262_v3  ;;  %v482_v5 = vld [vmem:[%s771_s2] ss:$0 sm:$0xff]  ;;  %s616_s18 = smov 64  }
  0x33   : > { %495 = vmatprep.subr.bf16.mxu0 %v613_v0  ;;  %s784_s22 = smov (!%p249_p7, %s666_s22), 1 }
  0x34   : > { %s479_s13 = sshll.u32 %s784_s22, 2 }
  0x35   : > { %s252_s16 = scalar_lea.vmem %s772_s3, %s479_s13  ;;  %s256_s22 = scalar_lea.vmem %s773_s4, %s479_s13 }
  0x36   : > { %496 = vmatpush3.bf16.msra.mxu0 %v545_v2  ;;  %s260_s30 = scalar_lea.vmem %s774_s5, %s479_s13 }
  0x39   : > { %498 = vmatmul.mubr.msk.bf16.vlgmr.msra.gmra.mrb[0].mxu0 %vm287_vm1, %v263_v4 }
 0x10c   : > { %v325_v6 = vpop.f32.mrb[0].mxu0 }
 0x10d   : > { %v326_v7 = vadd.f32 %v482_v5, %v325_v6  ;;  %v499_v8 = vpop.f32.mrb[1].mxu0 }
 0x10e   : > { %v328_v9 = vpop.f32.mrb[2].mxu0 }
 0x10f   : > { %v331_v10 = vpack.c.bf16 %v326_v7, %v326_v7  ;;  %v500_v11 = vpop.f32.mrb[3].mxu0 }
 0x111   : > { %337 = vrot.lane.b32.xlu0 %v331_v10, %s615_s17  ;;  %333 = vst.msk [vmem:[%s252_s16] sm:$0xf] %vm332_vm2, %v331_v10 }
 0x115   : > { %341 = vrot.lane.b32.xlu0 %v331_v10, %s616_s18 }
 0x183   : > { %v338_v12 = vpop.permute.xlu0 %337 }
 0x184   : > { %340 = vst.msk [vmem:[%s256_s22] sm:$0xf] %vm332_vm2, %v338_v12 }
 0x187   : > { %v342_v13 = vpop.permute.xlu0 %341 }
 0x188   : > { %344 = vst.msk [vmem:[%s260_s30] sm:$0xf] %vm332_vm2, %v342_v13 }
 0x189 PF: > { %p16_p8 = scmp.ge.s32.totalorder %s669_s23, 4   ;;  %s779_s18 = smov %s602_s19 }
 0x18a   : > { %s780_s19 = smov %s606_s20  ;;  %s781_s20 = smov %s679_s26 }
 0x18b   : > { %s782_s21 = smov %s669_s23  ;;  %18 = sbr.rel (!%p16_p8) target bundleno = 3 (0x3), region = 96 }
 0x192   :  { %392 = vsyncpa [#allocation3], 1 }
 0x193   :  { %394 = vsyncpa [#allocation3 + $0x1], 1 }

// kernel: multi_head_attention.5
= control target key start
LH: loop header
LB: loop body
LE: loop exit
PB: predicated region body
PF: predicated region fallthrough
CT: control target
= control target key end

     0   :  { %11 = vsyncpa [#allocation3], 0  ;;  %s748_s0 = inlined_call_operand.vmem [shape: bf16[16,32], index: 0, kind: input, shape index: {}]   ;;  %s749_s1 = inlined_call_operand.vmem [shape: f32[16,32], index: 1, kind: input, shape index: {}]   ;;  %s750_s2 = inlined_call_operand.vmem [shape: bf16[32,32], index: 2, kind: input, shape index: {}]   ;;  %s751_s3 = inlined_call_operand.vmem [shape: f32[1,32], index: 3, kind: input, shape index: {}]   ;;  %s752_s4 = inlined_call_operand.vmem [shape: f32[1,32], index: 4, kind: input, shape index: {}]   ;;  %s753_s5 = inlined_call_operand.vmem [shape: f32[1,32], index: 5, kind: input, shape index: {}]   ;;  %s754_s6 = inlined_call_operand.hbm [shape: f32[16,32], index: 6, kind: output, shape index: {}]  }
   0x1   :  { %13 = vsyncpa [#allocation3 + $0x1], 0  ;;  %s626_s21 = smov 0   ;;  %s628_s22 = smov 0  }
   0x2   :  { %s630_s23 = smov 0   ;;  %s632_s24 = smov 0  }
   0x3 LB: > { %s647_s25 = sadd.s32 4294967295, %s586_s24   ;;  %s451_s26 = sadd.s32 4294967294, %s586_s24   ;;  %s586_s24 = sphi %s632_s24, %s760_s24   ;;  %s582_s23 = sphi %s630_s23, %s759_s23   ;;  %s578_s22 = sphi %s628_s22, %s758_s22   ;;  %s574_s21 = sphi %s626_s21, %s757_s21  }
   0x4   : > { %s651_s27 = sadd.s32 1, %s586_s24   ;;  %s162_s28 = sadd.s32 1, %s582_s23 }
   0x5   : > { %s159_s29 = ssub.s32 %s586_s24, %s651_s27  ;;  %p172_p0 = scmp.ne.s32.totalorder %s582_s23, %s578_s22 }
   0x6   : > { %p160_p1 = scmp.eq.s32.totalorder %s159_s29, 0  ;;  %p173_p2 = scmp.eq.s32.totalorder %s647_s25, 1 }
   0x7   : > { %p178_p3 = scmp.ne.s32.totalorder %s578_s22, %s574_s21  ;;  %p179_p4 = scmp.eq.s32.totalorder %s451_s26, 1 }
   0x8   : > { %s662_s30 = scalar_select %p160_p1, %s582_s23, %s162_s28  }
   0x9   : > { %p664_p5 = por %p173_p2, %p172_p0  ;;  %p668_p6 = por %p179_p4, %p178_p3 }
   0xa   : > { %p454_p7 = scmp.ge.s32.totalorder %s586_s24, 1  ;;  %p223_p8 = scmp.lt.s32.totalorder %s586_s24, 3 }
   0xc   : > { %p224_p9 = pnand %p454_p7, %p223_p8 }
   0xd   : > { %v520_v0 = vld [vmem:[%s750_s2] sm:$0xff] (!%p224_p9)   ;;  %v588_v1 = vmov (!%p224_p9), 0.0   ;;  %v521_v2 = vld [vmem:[%s750_s2 + $0x8] sm:$0xff] (!%p224_p9)   ;;  %vm589_vm0 = vmmov (!%p224_p9), 0   ;;  %p256_p10 = scmp.lt.s32.totalorder (!%p224_p9), %s647_s25, 1  ;;  %vm290_vm1 = vcmask (!%p224_p9), 261120  }
   0xe   : > { %227 = sbr.rel (%p224_p9) target bundleno = 569 (0x239), region = 44  ;;  %471 = vmatprep.subr.bf16.mxu0 (!%p224_p9), %v588_v1  ;;  %475 = vmatprep.mubr.msk.bf16.mxu0 (!%p224_p9), %vm589_vm0, %v588_v1  ;;  %v458_v4 = vld [vmem:[%s751_s3] ss:$0 sm:$0xff] (!%p224_p9)  ;;  %s253_s9 = sand.u32 (!%p224_p9), 1, %s578_s22  }
   0xf   : > { %472 = vmatpush3.bf16.msra.mxu0 (!%p224_p9), %v520_v0  ;;  %s455_s10 = sshll.u32 (!%p224_p9), %s253_s9, 3  ;;  %v462_v22 = vld [vmem:[%s752_s4] ss:$0 sm:$0xff] (!%p224_p9)  ;;  %s465_s15 = sshll.u32 (!%p224_p9), %s647_s25, 7 }
  0x10   : > { %473 = vmatprep.subr.bf16.mxu0 (!%p224_p9), %v588_v1  ;;  %v463_v24 = vld [vmem:[%s753_s5] ss:$0 sm:$0xff] (!%p224_p9)  ;;  %s255_s16 = scalar_lea.vmem (!%p224_p9), [#allocation2], %s455_s10  ;;  %s705_s20 = scalar_lea.hbm (!%p224_p9), %s754_s6, %s465_s15 }
  0x13   : > { %474 = vmatpush3.bf16.msra.mxu0 (!%p224_p9), %v521_v2 }
  0x15   : > { %s257_s13 = scalar_select %p256_p10, %s647_s25, 1 }
  0x16   : > { %s590_s25 = smov [#allocation2]  }
  0x17   : > { %s456_s14 = sshll.u32 %s257_s13, 2  ;;  %s457_s18 = sshll.u32 %s257_s13, 3 }
  0x18   : > { %s259_s17 = scalar_lea.vmem %s748_s0, %s456_s14  ;;  %s263_s26 = scalar_lea.vmem %s749_s1, %s457_s18 }
  0x19   : > { %v266_v3 = vld [vmem:[%s259_s17] sm:$0xf]  ;;  %s380_s17 = sshll.u32 %s255_s16, 4  ;;  %s528_s29 = sshll.u32 %s590_s25, 4  ;;  %s707_s17 = int_to_ptr.vmem [resolvable:$true] %s380_s17  ;;  %s529_s29 = int_to_ptr.vmem [resolvable:$false] %s528_s29 }
  0x1a   : > { %476 = vmatmul.mubr.msk.bf16.vlgmr.msra.gmra.mrb[0].mxu0 %vm290_vm1, %v266_v3  ;;  %v265_v6 = vld [vmem:[%s263_s26] sm:$0xff]  ;;  %s367_s26 = scalar_lea.sflag [#allocation3], %s253_s9  ;;  %s524_s28 = scalar_lea.vmem %s707_s17, 128 }
  0x1b   : > { %p525_p11 = scmp.ne.s32.totalorder %s707_s17, %s524_s28  ;;  %s530_s10 = scalar_lea.vmem %s529_s29, 256 }
  0x1c   : > { %p531_p0 = scmp.lt.s32.totalorder %s707_s17, %s529_s29  ;;  %p532_p1 = scmp.lt.s32.totalorder %s530_s10, %s524_s28 }
  0x1d   : > { %p526_p12 = pnand %p525_p11, %p664_p5 }
  0x1e   : > { %p533_p2 = por %p532_p1, %p531_p0 }
  0x1f   : > { %p527_p13 = pneg %p526_p12 }
  0x21   : > { %p534_p3 = pnand %p533_p2, %p527_p13 }
  0xed   : > { %v328_v5 = vpop.f32.mrb[0].mxu0 }
  0xee   : > { %v329_v7 = vadd.f32 %v458_v4, %v328_v5  ;;  %v477_v8 = vpop.f32.mrb[1].mxu0 }
  0xef   : > { %v331_v9 = vpop.f32.mrb[2].mxu0 }
  0xf0   : > { %v478_v10 = vpop.f32.mrb[3].mxu0  ;;  %v334_v11 = vadd.f32 %v329_v7, %v265_v6 }
  0xf2   : > { %v335_v12 = vsel %vm290_vm1, %v334_v11, 0.0 }
  0xf3   : > { %336 = vadd.xlane.f32.xlu0 %v335_v12 }
 0x180   : > { %v337_v13 = vpop.xlane.xlu0 %336 }
 0x181   : > { %v339_v14 = vmul.f32 0.03125, %v337_v13 }
 0x183   : > { %v340_v15 = vsub.f32 %v334_v11, %v339_v14 }
 0x185   : > { %v341_v16 = vmul.f32 %v340_v15, %v340_v15 }
 0x187   : > { %v342_v17 = vsel %vm290_vm1, %v341_v16, 0.0 }
 0x188   : > { %343 = vadd.xlane.f32.xlu0 %v342_v17 }
 0x215   : > { %v344_v18 = vpop.xlane.xlu0 %343 }
 0x216   : > { %v345_v19 = vmul.f32 0.03125, %v344_v18 }
 0x218   : > { %v346_v20 = vadd.f32 1e-05, %v345_v19 }
 0x21a   : > { %522 = vrsqrt.f32 %v346_v20 }
 0x224   : > { %v523_v21 = vpop.eup %522 }
 0x225   : > { %v348_v23 = vmul.f32 %v523_v21, %v340_v15 }
 0x227   : > { %v356_v25 = vmul.f32 %v462_v22, %v348_v23 }
 0x229   : > { %v364_v26 = vadd.f32 %v463_v24, %v356_v25 }
 0x22b   : > { %365 = vst.msk [vmem:[%s255_s16] sm:$0xff] %vm290_vm1, %v364_v26 }
 0x22c   : > { %537 = shalt.err (!%p534_p3)
}
 0x22d   : > { %s538_s9 = scalar_lea.hbm %s705_s20, 128  ;;  %s542_s13 = scalar_lea.hbm %s754_s6, 256 }
 0x22e   : > { %p539_p4 = scmp.ne.s32.totalorder %s705_s20, %s538_s9  ;;  %p543_p9 = scmp.lt.u32.totalorder %s705_s20, %s754_s6 }
 0x22f   : > { %p544_p10 = scmp.lt.u32.totalorder %s542_s13, %s538_s9  ;;  %p546_p12 = scmp.lt.u32.totalorder %s538_s9, %s705_s20 }
 0x230   : > { %p540_p7 = pnand %p539_p4, %p664_p5 }
 0x231   : > { %p545_p11 = por %p544_p10, %p543_p9 }
 0x232   : > { %p541_p8 = pneg %p540_p7 }
 0x233   : > { %p547_p13 = por %p546_p12, %p545_p11 }
 0x235   : > { %p548_p0 = pnand %p547_p13, %p541_p8 }
 0x237   : > { %551 = shalt.err (!%p548_p0)
}
 0x238   : > { %479 = dma.vmem_to_hbm [thread:$0]  (%p664_p5), %s707_s17, 128, %s705_s20, %s367_s26  }
 0x239 PF: > { %p485_p1 = scmp.ge.s32.totalorder %s586_s24, 2  ;;  %s392_s16 = sand.u32 1, %s574_s21  }
 0x23a   : > { %s393_s18 = scalar_lea.sflag [#allocation3], %s392_s16 }
 0x23b   : > { %p482_p2 = pnand %p485_p1, %p668_p6 }
 0x23d   : > { %569 = dma.done.wait (!%p482_p2), %s393_s18, 128  }
 0x23e   : > { %571 = vsyncadd (!%p482_p2), %s393_s18, 4294967168  ;;  %p16_p3 = scmp.ge.s32.totalorder %s651_s27, 4   ;;  %s757_s21 = smov %s578_s22 }
 0x23f   : > { %s758_s22 = smov %s582_s23  ;;  %s759_s23 = smov %s662_s30 }
 0x240   : > { %s760_s24 = smov %s651_s27  ;;  %18 = sbr.rel (!%p16_p3) target bundleno = 3 (0x3), region = 82 }
 0x247   :  { %398 = vsyncpa [#allocation3], 1 }
 0x248   :  { %400 = vsyncpa [#allocation3 + $0x1], 1 }

// kernel: multi_head_attention.4
= control target key start
LH: loop header
LB: loop body
LE: loop exit
PB: predicated region body
PF: predicated region fallthrough
CT: control target
= control target key end

     0   :  { %s1164_s12 = smov 0   ;;  %s1166_s13 = smov 0   ;;  %s1350_s0 = inlined_call_operand.vmem [shape: bf16[8,8,8], index: 0, kind: input, shape index: {}]   ;;  %s1351_s1 = inlined_call_operand.vmem [shape: bf16[8,8,8], index: 1, kind: input, shape index: {}]   ;;  %s1352_s2 = inlined_call_operand.vmem [shape: bf16[8,8,8], index: 2, kind: input, shape index: {}]   ;;  %s1353_s3 = inlined_call_operand.vmem [shape: bf16[8,8,8], index: 3, kind: output, shape index: {}]  }
   0x1   :  { %s1168_s14 = smov 0  }
   0x2 LB: > { %s32_s15 = sadd.s32 1, %s1134_s13  ;;  %p979_p0 = scmp.ge.s32.totalorder %s1138_s14, 1  ;;  %s1138_s14 = sphi %s1168_s14, %s13_s14   ;;  %s1134_s13 = sphi %s1166_s13, %s1355_s13   ;;  %s1130_s12 = sphi %s1164_s12, %s1354_s12  }
   0x3   : > { %p34_p1 = scmp.ge.s32.totalorder %s32_s15, 2  ;;  %p196_p2 = scmp.lt.s32.totalorder %s1138_s14, 3 }
   0x5   : > { %s1357_s15 = smov (%p34_p1, %s32_s15), 0  ;;  %p197_p3 = pnand %p979_p0, %p196_p2 }
   0x6   : > { %s980_s16 = sshll.u32 (!%p197_p3), %s1130_s12, 2  ;;  %vm292_vm0 = vcmask (!%p197_p3), 64512   ;;  %v1140_v0 = vmov (!%p197_p3), 0.0   ;;  %vm1141_vm1 = vmmov (!%p197_p3), 0   ;;  %vm283_vm2 = vcmask (!%p197_p3), 7168  }
   0x7   : > { %200 = sbr.rel (%p197_p3) target bundleno = 835 (0x343), region = 32  ;;  %1014 = vmatprep.subr.bf16.mxu0 (!%p197_p3), %v1140_v0  ;;  %p243_p4 = scmp.lt.s32.totalorder (!%p197_p3), %s980_s16, 7  ;;  %293 = vst.msk [vmem:[#allocation4] sm:$0xff] (!%p197_p3), %vm292_vm0, %v1140_v0  ;;  %294 = vst.msk [vmem:[#allocation4 + $0x8] sm:$0xff] (!%p197_p3), %vm292_vm0, %v1140_v0  ;;  %1020 = vmatprep.subr.bf16.mxu1 (!%p197_p3), %v1140_v0  ;;  %v1142_v13 = vmov (!%p197_p3), -inf   ;;  %v1143_v34 = vmov (!%p197_p3), 0  }
   0x8   : > { %295 = vst.msk [vmem:[#allocation4 + $0x10] sm:$0xff] (!%p197_p3), %vm292_vm0, %v1140_v0  ;;  %296 = vst.msk [vmem:[#allocation4 + $0x18] sm:$0xff] (!%p197_p3), %vm292_vm0, %v1140_v0  ;;  %1016 = vmatprep.mubr.msk.bf16.mxu0 (!%p197_p3), %vm1141_vm1, %v1140_v0  ;;  %1022 = vmatprep.mubr.msk.bf16.mxu1 (!%p197_p3), %vm1141_vm1, %v1140_v0  ;;  %vm622_vm3 = vcmask (!%p197_p3), 1043456   ;;  %vm859_vm4 = vcmask (!%p197_p3), 60416  }
   0x9   : > { %284 = vst.msk [vmem:[#allocation2] sm:$0xff] (!%p197_p3), %vm283_vm2, %v1142_v13  ;;  %285 = vst.msk [vmem:[#allocation2 + $0x8] sm:$0xff] (!%p197_p3), %vm283_vm2, %v1142_v13  ;;  %1090 = vset.pattern.permute.xlu0 (!%p197_p3), %v1143_v34  ;;  %1091 = vset.pattern.permute.xlu1 (!%p197_p3), %v1143_v34 }
   0xa   : > { %286 = vst.msk [vmem:[#allocation2 + $0x10] sm:$0xff] (!%p197_p3), %vm283_vm2, %v1142_v13  ;;  %287 = vst.msk [vmem:[#allocation2 + $0x18] sm:$0xff] (!%p197_p3), %vm283_vm2, %v1142_v13 }
   0xb   : > { %288 = vst.msk [vmem:[#allocation3] sm:$0xff] (!%p197_p3), %vm283_vm2, %v1140_v0  ;;  %289 = vst.msk [vmem:[#allocation3 + $0x8] sm:$0xff] (!%p197_p3), %vm283_vm2, %v1140_v0 }
   0xc   : > { %290 = vst.msk [vmem:[#allocation3 + $0x10] sm:$0xff] (!%p197_p3), %vm283_vm2, %v1140_v0  ;;  %291 = vst.msk [vmem:[#allocation3 + $0x18] sm:$0xff] (!%p197_p3), %vm283_vm2, %v1140_v0 }
   0xe   : > { %s1359_s16 = smov (!%p243_p4, %s980_s16), 7 }
   0xf   : > { %s1196_s17 = sshll.u32 %s1359_s16, 2 }
  0x10   : > { %s258_s20 = scalar_lea.vmem %s1351_s1, %s1196_s17  ;;  %s249_s23 = scalar_lea.vmem %s1350_s0, %s1196_s17  ;;  %v1254_v35 = vld [vmem:[#allocation2] sm:$0xff]  ;;  %v1259_v38 = vld [vmem:[#allocation2 + $0x8] sm:$0xff] }
  0x11   : > { %v301_v1 = vld [vmem:[%s258_s20] sm:$0xf]  ;;  %v302_v2 = vld [vmem:[%s258_s20 + $0x4] sm:$0xf]  ;;  %v303_v5 = vld [vmem:[%s258_s20 + $0x8] sm:$0xf]  ;;  %s267_s26 = scalar_lea.vmem %s1352_s2, %s1196_s17  ;;  %s276_s29 = scalar_lea.vmem %s1353_s3, %s1196_s17 }
  0x12   : > { %v310_v3 = vsel %vm292_vm0, %v301_v1, 0  ;;  %v356_v4 = vsel %vm292_vm0, %v302_v2, 0  ;;  %v304_v6 = vld [vmem:[%s258_s20 + $0xc] sm:$0xf]  ;;  %v297_v7 = vld [vmem:[%s249_s23] sm:$0xf] }
  0x13   : > { %1015 = vmatpush3.bf16.xpose.msra.mxu0 %v310_v3  ;;  %1021 = vmatpush3.bf16.xpose.msra.mxu1 %v356_v4  ;;  %v298_v8 = vld [vmem:[%s249_s23 + $0x4] sm:$0xf]  ;;  %v402_v9 = vsel %vm292_vm0, %v303_v5, 0  ;;  %v448_v10 = vsel %vm292_vm0, %v304_v6, 0  ;;  %v299_v11 = vld [vmem:[%s249_s23 + $0x8] sm:$0xf] }
  0x14   : > { %1026 = vmatprep.subr.bf16.mxu0 %v1140_v0  ;;  %1032 = vmatprep.subr.bf16.mxu1 %v1140_v0  ;;  %v300_v12 = vld [vmem:[%s249_s23 + $0xc] sm:$0xf]  ;;  %v1269_v42 = vld [vmem:[#allocation2 + $0x10] sm:$0xff]  ;;  %v1279_v46 = vld [vmem:[#allocation2 + $0x18] sm:$0xff] }
  0x15   : > { %v615_v51 = vld [vmem:[%s267_s26] sm:$0xf]  ;;  %v616_v53 = vld [vmem:[%s267_s26 + $0x4] sm:$0xf]  ;;  %v617_v55 = vld [vmem:[%s267_s26 + $0x8] sm:$0xf] }
  0x16   : > { %v624_v52 = vsel %vm622_vm3, %v615_v51, 0  ;;  %v670_v54 = vsel %vm622_vm3, %v616_v53, 0  ;;  %v716_v56 = vsel %vm622_vm3, %v617_v55, 0  ;;  %v618_v57 = vld [vmem:[%s267_s26 + $0xc] sm:$0xf]  ;;  %v556_v34 = vld [vmem:[#allocation3 + $0x10] sm:$0xff] }
  0x17   : > { %v762_v58 = vsel %vm622_vm3, %v618_v57, 0  ;;  %v583_v51 = vld [vmem:[#allocation4] sm:$0xff] }
  0x1a   : > { %1017 = vmatmul.mubr.msk.bf16.vlgmr.msra.gmra.mrb[0].mxu0 %vm292_vm0, %v297_v7  ;;  %1023 = vmatmul.mubr.msk.bf16.vlgmr.msra.gmra.mrb[0].mxu1 %vm292_vm0, %v298_v8 }
  0x1b   : > { %1027 = vmatpush3.bf16.xpose.msra.mxu0 %v402_v9  ;;  %1033 = vmatpush3.bf16.xpose.msra.mxu1 %v448_v10 }
  0x1c   : > { %1028 = vmatprep.mubr.msk.bf16.mxu0 %vm1141_vm1, %v1140_v0  ;;  %1034 = vmatprep.mubr.msk.bf16.mxu1 %vm1141_vm1, %v1140_v0 }
  0x1d   : > { %1038 = vmatprep.subr.bf16.mxu0 %v1140_v0  ;;  %1044 = vmatprep.subr.bf16.mxu1 %v1140_v0 }
  0x22   : > { %1029 = vmatmul.mubr.msk.bf16.vlgmr.msra.gmra.mrb[4].mxu0 %vm292_vm0, %v299_v11  ;;  %1035 = vmatmul.mubr.msk.bf16.vlgmr.msra.gmra.mrb[4].mxu1 %vm292_vm0, %v300_v12 }
  0x23   : > { %1040 = vmatprep.mubr.msk.bf16.mxu0 %vm1141_vm1, %v1140_v0  ;;  %1046 = vmatprep.mubr.msk.bf16.mxu1 %vm1141_vm1, %v1140_v0 }
  0x24   : > { %1039 = vmatpush3.bf16.msra.mxu0 %v624_v52  ;;  %1045 = vmatpush3.bf16.msra.mxu1 %v670_v54  ;;  %v584_v54 = vld [vmem:[#allocation4 + $0x8] sm:$0xff] }
  0x25   : > { %1050 = vmatprep.subr.bf16.mxu0 %v1140_v0  ;;  %1056 = vmatprep.subr.bf16.mxu1 %v1140_v0 }
  0xed   : > { %v1238_v14 = vpop.f32.mrb[0].mxu0  ;;  %v1240_v15 = vpop.f32.mrb[0].mxu1 }
  0xee   : > { %v1018_v16 = vpop.f32.mrb[1].mxu0  ;;  %v494_v17 = vsel %vm292_vm0, %v1238_v14, -inf  ;;  %v1024_v18 = vpop.f32.mrb[1].mxu1  ;;  %v497_v23 = vsel %vm292_vm0, %v1240_v15, -inf }
  0xef   : > { %495 = vmax.xlane.f32.xlu0 %v494_v17  ;;  %v349_v19 = vpop.f32.mrb[2].mxu0  ;;  %v395_v20 = vpop.f32.mrb[2].mxu1 }
  0xf0   : > { %v1019_v21 = vpop.f32.mrb[3].mxu0  ;;  %v1025_v22 = vpop.f32.mrb[3].mxu1 }
  0xf3   : > { %498 = vmax.xlane.f32.xlu0 %v497_v23 }
  0xf5   : > { %v1246_v24 = vpop.f32.mrb[4].mxu0  ;;  %v1248_v25 = vpop.f32.mrb[4].mxu1 }
  0xf6   : > { %v1030_v26 = vpop.f32.mrb[5].mxu0  ;;  %v500_v27 = vsel %vm292_vm0, %v1246_v24, -inf  ;;  %v1036_v28 = vpop.f32.mrb[5].mxu1  ;;  %v503_v33 = vsel %vm292_vm0, %v1248_v25, -inf }
  0xf7   : > { %501 = vmax.xlane.f32.xlu1 %v500_v27  ;;  %v441_v29 = vpop.f32.mrb[6].mxu0  ;;  %v487_v30 = vpop.f32.mrb[6].mxu1  ;;  %v554_v27 = vld [vmem:[#allocation3] sm:$0xff] }
  0xf8   : > { %v1031_v31 = vpop.f32.mrb[7].mxu0  ;;  %v1037_v32 = vpop.f32.mrb[7].mxu1  ;;  %v555_v30 = vld [vmem:[#allocation3 + $0x8] sm:$0xff] }
  0xfb   : > { %504 = vmax.xlane.f32.xlu1 %v503_v33 }
 0x17c   : > { %v496_v36 = vpop.xlane.xlu0 %495 }
 0x17d   : > { %v1257_v37 = vmax.f32 %v1254_v35, %v496_v36 }
 0x17f   : > { %v510_v39 = vsub.f32 %v1254_v35, %v1257_v37  ;;  %812 = vst.msk [vmem:[#allocation2] sm:$0xff] %vm283_vm2, %v1257_v37  ;;  %524 = vperm.xlu0 %1090, %v1257_v37  }
 0x180   : > { %v499_v40 = vpop.xlane.xlu0 %498 }
 0x181   : > { %v1267_v41 = vmax.f32 %v1259_v38, %v499_v40 }
 0x183   : > { %v511_v43 = vsub.f32 %v1259_v38, %v1267_v41  ;;  %813 = vst.msk [vmem:[#allocation2 + $0x8] sm:$0xff] %vm283_vm2, %v1267_v41  ;;  %529 = vperm.xlu1 %1091, %v1267_v41   ;;  %v557_v38 = vld [vmem:[#allocation3 + $0x18] sm:$0xff] }
 0x184   : > { %v502_v44 = vpop.xlane.xlu1 %501 }
 0x185   : > { %v1277_v45 = vmax.f32 %v1269_v42, %v502_v44  ;;  %v516_v18 = vmul.f32 1.442695, %v511_v43 }
 0x187   : > { %v512_v47 = vsub.f32 %v1269_v42, %v1277_v45  ;;  %814 = vst.msk [vmem:[#allocation2 + $0x10] sm:$0xff] %vm283_vm2, %v1277_v45  ;;  %534 = vperm.xlu1 %1091, %v1277_v45  }
 0x188   : > { %v505_v48 = vpop.xlane.xlu1 %504 }
 0x189   : > { %v1287_v49 = vmax.f32 %v1279_v46, %v505_v48  ;;  %v518_v21 = vmul.f32 1.442695, %v512_v47 }
 0x18b   : > { %v513_v50 = vsub.f32 %v1279_v46, %v1287_v49  ;;  %815 = vst.msk [vmem:[#allocation2 + $0x18] sm:$0xff] %vm283_vm2, %v1287_v49  ;;  %539 = vperm.xlu1 %1091, %v1287_v49  }
 0x18d   : > { %v520_v22 = vmul.f32 1.442695, %v513_v50 }
 0x1fe   : > { %v525_v59 = vpop.permute.xlu0 %524 }
 0x1ff   : > { %v542_v60 = vsub.f32 %v1238_v14, %v525_v59 }
 0x201   : > { %v546_v61 = vmul.f32 1.442695, %v542_v60 }
 0x202   : > { %v530_v62 = vpop.permute.xlu1 %529 }
 0x203   : > { %1092 = vpow2.f32 %v546_v61  ;;  %v543_v63 = vsub.f32 %v1240_v15, %v530_v62 }
 0x205   : > { %v548_v1 = vmul.f32 1.442695, %v543_v63  ;;  %v585_v63 = vld [vmem:[#allocation4 + $0x10] sm:$0xff] }
 0x206   : > { %v535_v2 = vpop.permute.xlu1 %534 }
 0x207   : > { %1094 = vpow2.f32 %v548_v1  ;;  %v544_v3 = vsub.f32 %v1246_v24, %v535_v2 }
 0x209   : > { %v550_v4 = vmul.f32 1.442695, %v544_v3 }
 0x20a   : > { %v540_v5 = vpop.permute.xlu1 %539 }
 0x20b   : > { %1096 = vpow2.f32 %v550_v4  ;;  %v545_v6 = vsub.f32 %v1248_v25, %v540_v5 }
 0x20d   : > { %v1093_v7 = vpop.eup %1092  ;;  %v552_v8 = vmul.f32 1.442695, %v545_v6 }
 0x20e   : > { %v562_v9 = vsel %vm292_vm0, %v1093_v7, 0.0  ;;  %v611_v10 = vpack.c.bf16 %v1093_v7, %v1093_v7  ;;  %v586_v7 = vld [vmem:[#allocation4 + $0x18] sm:$0xff] }
 0x20f   : > { %1098 = vpow2.f32 %v552_v8  ;;  %563 = vadd.xlane.f32.xlu1 %v562_v9 }
 0x210   : > { %1041 = vmatmul.mubr.msk.bf16.vlgmr.msra.gmra.mrb[8].mxu0 %vm292_vm0, %v611_v10  ;;  %1100 = vpow2.f32 %v516_v18 }
 0x211   : > { %v1095_v11 = vpop.eup %1094  ;;  %1051 = vmatpush3.bf16.msra.mxu0 %v716_v56  ;;  %1052 = vmatprep.mubr.msk.bf16.mxu0 %vm1141_vm1, %v1140_v0 }
 0x212   : > { %v565_v12 = vsel %vm292_vm0, %v1095_v11, 0.0  ;;  %v612_v13 = vpack.c.bf16 %v1095_v11, %v1095_v11 }
 0x213   : > { %566 = vadd.xlane.f32.xlu0 %v565_v12 }
 0x214   : > { %1047 = vmatmul.mubr.msk.bf16.vlgmr.msra.gmra.mrb[8].mxu1 %vm292_vm0, %v612_v13 }
 0x215   : > { %v1097_v14 = vpop.eup %1096  ;;  %1057 = vmatpush3.bf16.msra.mxu1 %v762_v58  ;;  %1058 = vmatprep.mubr.msk.bf16.mxu1 %vm1141_vm1, %v1140_v0  ;;  %v514_v0 = vmul.f32 1.442695, %v510_v39 }
 0x216   : > { %v568_v15 = vsel %vm292_vm0, %v1097_v14, 0.0  ;;  %v613_v16 = vpack.c.bf16 %v1097_v14, %v1097_v14 }
 0x217   : > { %569 = vadd.xlane.f32.xlu1 %v568_v15  ;;  %1102 = vpow2.f32 %v514_v0 }
 0x218   : > { %1053 = vmatmul.mubr.msk.bf16.vlgmr.msra.gmra.mrb[12].mxu0 %vm292_vm0, %v613_v16  ;;  %1104 = vpow2.f32 %v518_v21 }
 0x219   : > { %v1099_v17 = vpop.eup %1098  ;;  %1106 = vpow2.f32 %v520_v22 }
 0x21a   : > { %v571_v19 = vsel %vm292_vm0, %v1099_v17, 0.0  ;;  %v614_v20 = vpack.c.bf16 %v1099_v17, %v1099_v17  ;;  %v1101_v23 = vpop.eup %1100 }
 0x21b   : > { %572 = vadd.xlane.f32.xlu1 %v571_v19  ;;  %v559_v32 = vmul.f32 %v1101_v23, %v555_v30 }
 0x21c   : > { %1059 = vmatmul.mubr.msk.bf16.vlgmr.msra.gmra.mrb[12].mxu1 %vm292_vm0, %v614_v20 }
 0x221   : > { %v1103_v24 = vpop.eup %1102 }
 0x222   : > { %v1105_v25 = vpop.eup %1104  ;;  %v558_v28 = vmul.f32 %v1103_v24, %v554_v27 }
 0x223   : > { %v1107_v26 = vpop.eup %1106  ;;  %v560_v36 = vmul.f32 %v1105_v25, %v556_v34 }
 0x224   : > { %v561_v41 = vmul.f32 %v1107_v26, %v557_v38 }
 0x229   : > { %594 = vperm.xlu0 %1090, %v1101_v23  }
 0x22c   : > { %589 = vperm.xlu1 %1091, %v1103_v24  }
 0x230   : > { %599 = vperm.xlu1 %1091, %v1105_v25  }
 0x234   : > { %604 = vperm.xlu1 %1091, %v1107_v26  }
 0x29c   : > { %v564_v29 = vpop.xlane.xlu1 %563 }
 0x29d   : > { %v574_v31 = vadd.f32 %v564_v29, %v558_v28 }
 0x29f   : > { %579 = vst.msk [vmem:[#allocation3] sm:$0xff] %vm283_vm2, %v574_v31 }
 0x2a0   : > { %v567_v33 = vpop.xlane.xlu0 %566 }
 0x2a1   : > { %v575_v35 = vadd.f32 %v567_v33, %v559_v32 }
 0x2a3   : > { %580 = vst.msk [vmem:[#allocation3 + $0x8] sm:$0xff] %vm283_vm2, %v575_v35 }
 0x2a4   : > { %v570_v37 = vpop.xlane.xlu1 %569 }
 0x2a5   : > { %v576_v39 = vadd.f32 %v570_v37, %v560_v36 }
 0x2a6   : > { %v819_v40 = vld [vmem:[#allocation3] sm:$0xff] }
 0x2a7   : > { %581 = vst.msk [vmem:[#allocation3 + $0x10] sm:$0xff] %vm283_vm2, %v576_v39  ;;  %1108 = vrcp.f32 %v819_v40 }
 0x2a8   : > { %v573_v42 = vpop.xlane.xlu1 %572  ;;  %v595_v55 = vpop.permute.xlu0 %594 }
 0x2a9   : > { %v577_v43 = vadd.f32 %v573_v42, %v561_v41  ;;  %v608_v61 = vmul.f32 %v595_v55, %v584_v54 }
 0x2aa   : > { %v820_v44 = vld [vmem:[#allocation3 + $0x8] sm:$0xff] }
 0x2ab   : > { %582 = vst.msk [vmem:[#allocation3 + $0x18] sm:$0xff] %vm283_vm2, %v577_v43  ;;  %1110 = vrcp.f32 %v820_v44 }
 0x2ac   : > { %v590_v52 = vpop.permute.xlu1 %589 }
 0x2ad   : > { %v607_v53 = vmul.f32 %v590_v52, %v583_v51 }
 0x2ae   : > { %v821_v45 = vld [vmem:[#allocation3 + $0x10] sm:$0xff] }
 0x2af   : > { %1112 = vrcp.f32 %v821_v45 }
 0x2b0   : > { %v600_v59 = vpop.permute.xlu1 %599 }
 0x2b1   : > { %v1109_v46 = vpop.eup %1108  ;;  %v609_v5 = vmul.f32 %v600_v59, %v585_v63 }
 0x2b2   : > { %833 = vperm.xlu1 %1091, %v1109_v46   ;;  %v822_v47 = vld [vmem:[#allocation3 + $0x18] sm:$0xff] }
 0x2b3   : > { %1114 = vrcp.f32 %v822_v47 }
 0x2b4   : > { %v605_v8 = vpop.permute.xlu1 %604 }
 0x2b5   : > { %v1111_v48 = vpop.eup %1110  ;;  %v610_v13 = vmul.f32 %v605_v8, %v586_v7 }
 0x2b6   : > { %838 = vperm.xlu0 %1090, %v1111_v48  }
 0x2b9   : > { %v1113_v49 = vpop.eup %1112 }
 0x2ba   : > { %843 = vperm.xlu1 %1091, %v1113_v49  }
 0x2bd   : > { %v1115_v50 = vpop.eup %1114 }
 0x2be   : > { %848 = vperm.xlu0 %1090, %v1115_v50  }
 0x2e3   : > { %v660_v56 = vpop.f32.mrb[8].mxu0 }
 0x2e4   : > { %v804_v57 = vadd.f32 %v660_v56, %v607_v53  ;;  %v1042_v58 = vpop.f32.mrb[9].mxu0 }
 0x2e5   : > { %v663_v60 = vpop.f32.mrb[10].mxu0 }
 0x2e6   : > { %808 = vst.msk [vmem:[#allocation4] sm:$0xff] %vm292_vm0, %v804_v57  ;;  %v1043_v62 = vpop.f32.mrb[11].mxu0 }
 0x2e7   : > { %v706_v1 = vpop.f32.mrb[8].mxu1 }
 0x2e8   : > { %v805_v2 = vadd.f32 %v706_v1, %v608_v61  ;;  %v1048_v3 = vpop.f32.mrb[9].mxu1 }
 0x2e9   : > { %v709_v4 = vpop.f32.mrb[10].mxu1 }
 0x2ea   : > { %809 = vst.msk [vmem:[#allocation4 + $0x8] sm:$0xff] %vm292_vm0, %v805_v2  ;;  %v1049_v6 = vpop.f32.mrb[11].mxu1 }
 0x2eb   : > { %v752_v9 = vpop.f32.mrb[12].mxu0 }
 0x2ec   : > { %v806_v10 = vadd.f32 %v752_v9, %v609_v5  ;;  %v1054_v11 = vpop.f32.mrb[13].mxu0 }
 0x2ed   : > { %v755_v12 = vpop.f32.mrb[14].mxu0  ;;  %v827_v0 = vld [vmem:[#allocation4] sm:$0xff] }
 0x2ee   : > { %810 = vst.msk [vmem:[#allocation4 + $0x10] sm:$0xff] %vm292_vm0, %v806_v10  ;;  %v1055_v14 = vpop.f32.mrb[15].mxu0 }
 0x2ef   : > { %v798_v15 = vpop.f32.mrb[12].mxu1 }
 0x2f0   : > { %v807_v16 = vadd.f32 %v798_v15, %v610_v13  ;;  %v1060_v17 = vpop.f32.mrb[13].mxu1 }
 0x2f1   : > { %v801_v18 = vpop.f32.mrb[14].mxu1  ;;  %v828_v23 = vld [vmem:[#allocation4 + $0x8] sm:$0xff] }
 0x2f2   : > { %811 = vst.msk [vmem:[#allocation4 + $0x18] sm:$0xff] %vm292_vm0, %v807_v16  ;;  %v1061_v19 = vpop.f32.mrb[15].mxu1 }
 0x2f5   : > { %v829_v28 = vld [vmem:[#allocation4 + $0x10] sm:$0xff] }
 0x2f9   : > { %v830_v32 = vld [vmem:[#allocation4 + $0x18] sm:$0xff] }
 0x331   : > { %v834_v20 = vpop.permute.xlu1 %833 }
 0x332   : > { %v851_v21 = vmul.f32 %v834_v20, %v827_v0 }
 0x334   : > { %v855_v22 = vpack.c.bf16 %v851_v21, %v851_v21 }
 0x335   : > { %v839_v24 = vpop.permute.xlu0 %838 }
 0x336   : > { %860 = vst.msk [vmem:[%s276_s29] sm:$0xf] %vm859_vm4, %v855_v22  ;;  %v852_v25 = vmul.f32 %v839_v24, %v828_v23 }
 0x338   : > { %v856_v26 = vpack.c.bf16 %v852_v25, %v852_v25 }
 0x339   : > { %v844_v27 = vpop.permute.xlu1 %843 }
 0x33a   : > { %861 = vst.msk [vmem:[%s276_s29 + $0x4] sm:$0xf] %vm859_vm4, %v856_v26  ;;  %v853_v29 = vmul.f32 %v844_v27, %v829_v28 }
 0x33c   : > { %v857_v30 = vpack.c.bf16 %v853_v29, %v853_v29 }
 0x33d   : > { %v849_v31 = vpop.permute.xlu0 %848 }
 0x33e   : > { %862 = vst.msk [vmem:[%s276_s29 + $0x8] sm:$0xf] %vm859_vm4, %v857_v30  ;;  %v854_v33 = vmul.f32 %v849_v31, %v830_v32 }
 0x340   : > { %v858_v34 = vpack.c.bf16 %v854_v33, %v854_v33 }
 0x342   : > { %863 = vst.msk [vmem:[%s276_s29 + $0xc] sm:$0xf] %vm859_vm4, %v858_v34 }
 0x343 PF: > { %s13_s14 = sadd.s32 1, %s1138_s14   ;;  %s1354_s12 = smov %s1134_s13 }
 0x344   : > { %p10_p5 = scmp.ge.s32.totalorder %s13_s14, 4   ;;  %s1355_s13 = smov %s1357_s15 }
 0x346   :  { %12 = sbr.rel (!%p10_p5) target bundleno = 2 (0x2), region = 76 }

</bundles_post_ra>
